<compile_context>
chip_gen: v6e
topology: v6e:2x2x1
jax: 0.10.0
libtpu: 0.0.40
codegen_flags: <defaults>
</compile_context>

<pallas_src>
import jax
import jax.numpy as jnp
from jax import lax
from jax.experimental import pallas as pl
from jax.experimental.pallas import tpu as pltpu

# hyperparameters (the args.* values the module depends on), kept small
N_EMBD = 32        # args.n_embd
BLOCK_SIZE = 8     # args.block_size  (== T below)
NUM_HEADS = 4
HEAD_SIZE = N_EMBD // NUM_HEADS   # 8
DROPOUT = 0.0      # eval mode -> identity anyway


def _make_mha_kernel(BB, T, C, H, S):
    """Build a kernel that processes BB batch elements per grid step."""
    R = BB * T        # flattened (batch, time) rows fed to the MXU
    G = H * BB        # (head, batch) groups for the batched attention math

    def kernel(x_ref, wq_ref, wk_ref, wv_ref, wp_ref, bp_ref, o_ref):
        # x_ref:  (BB, T, C)  f32
        # wq_ref: (H, C, S)   bf16
        # wk_ref: (H, C, S)   bf16
        # wv_ref: (H, C, S)   bf16
        # wp_ref: (H, S, C)   bf16   (output projection, head-major)
        # bp_ref: (1, C)      f32
        # o_ref:  (BB, T, C)

        # Flatten (batch, time) rows -> one dense MXU operand; bf16 for the
        # single-pass MXU path.
        x2 = x_ref[...].reshape(R, C).astype(jnp.bfloat16)

        # Head-batched Q/K/V projections: no lane slicing, no jnp.stack.
        q_h = jnp.einsum('rc,hcs->hrs', x2, wq_ref[...],
                         preferred_element_type=jnp.float32)     # (H, R, S) f32
        k_h = jnp.einsum('rc,hcs->hrs', x2, wk_ref[...],
                         preferred_element_type=jnp.float32)
        v_h = jnp.einsum('rc,hcs->hrs', x2, wv_ref[...],
                         preferred_element_type=jnp.float32)

        # (H, BB*T, S) -> (H*BB, T, S): leading-dim regroup so attention never
        # crosses batch rows.  Cast to bf16 for the score / PV matmuls.
        q_g = q_h.reshape(G, T, S).astype(jnp.bfloat16)
        k_g = k_h.reshape(G, T, S).astype(jnp.bfloat16)
        v_g = v_h.reshape(G, T, S).astype(jnp.bfloat16)

        # Causal additive bias (f32), computed once, broadcast over all groups.
        row = lax.broadcasted_iota(jnp.int32, (T, T), 0)
        col = lax.broadcasted_iota(jnp.int32, (T, T), 1)
        bias = jnp.where(col <= row, 0.0, -1e30).astype(jnp.float32)  # (T, T)

        scale = jnp.float32(S ** -0.5)

        # Batched scores (no explicit transpose), f32 accumulation + f32 mask.
        scores = jnp.einsum('gts,gus->gtu', q_g, k_g,
                            preferred_element_type=jnp.float32) * scale
        scores = scores + bias                                    # (G, T, T)

        # Numerically-stable softmax in f32; EUP reciprocal for the divide.
        m = jnp.max(scores, axis=-1, keepdims=True)
        e = jnp.exp(scores - m)
        denom = jnp.sum(e, axis=-1, keepdims=True)
        p = e * pl.reciprocal(denom, approx=True)                 # (G, T, T) f32

        # Batched PV (probabilities cast to bf16 only for the matmul).
        ctx = jnp.einsum('gtu,gus->gts', p.astype(jnp.bfloat16), v_g,
                         preferred_element_type=jnp.float32)      # (G, T, S)
        ctx = ctx.reshape(H, R, S).astype(jnp.bfloat16)           # (H, R, S)

        # Output projection directly from the head-major context: H tiny MXU
        # pushes + a cheap leading-dim sum.  No concat scratch, no masked
        # sub-128 lane stores, no VMEM readback.
        out = jnp.einsum('hrs,hsc->hrc', ctx, wp_ref[...],
                         preferred_element_type=jnp.float32)      # (H, R, C)
        out = jnp.sum(out, axis=0) + bp_ref[...]                  # (R, C)

        o_ref[...] = out.reshape(BB, T, C).astype(o_ref.dtype)

    return kernel


def multi_head_attention(x, w_q, w_k, w_v, w_proj_t, b_proj, num_heads):
    """x: (B, T, C); w_q/w_k/w_v: (H, C, S); w_proj_t: (H*S, C); b_proj: (1, C).

    Returns (B, T, C).  Matches the PyTorch module in eval mode.
    """
    B, T, C = x.shape
    H = num_heads
    HS = w_proj_t.shape[0]
    S = HS // H

    # bf16 weights: single-pass MXU operands + half the weight DMA bytes.
    wq_h = w_q.astype(jnp.bfloat16)                          # (H, C, S)
    wk_h = w_k.astype(jnp.bfloat16)
    wv_h = w_v.astype(jnp.bfloat16)
    wp_h = w_proj_t.reshape(H, S, C).astype(jnp.bfloat16)    # (H, S, C)

    # Grid sizing: a TPU grid is a serial loop per TensorCore, so only split
    # the batch when every core would still get >= 128 rows of real work, and
    # in that case request actual cross-core sharding (CORE_PARALLEL); plain
    # "parallel" does not change codegen.  At small sizes a single grid step
    # avoids the extra per-step (~0.35us) cost and weight re-binding.
    if B % 2 == 0 and (B // 2) * T >= 128:
        n_blocks = 2
        dim_sem = (pltpu.CORE_PARALLEL,)
    else:
        n_blocks = 1
        dim_sem = ("arbitrary",)
    BB = B // n_blocks

    kernel = _make_mha_kernel(BB, T, C, H, S)

    return pl.pallas_call(
        kernel,
        out_shape=jax.ShapeDtypeStruct((B, T, C), x.dtype),
        grid_spec=pltpu.PrefetchScalarGridSpec(
            num_scalar_prefetch=0,
            grid=(n_blocks,),
            in_specs=[
                pl.BlockSpec((BB, T, C), lambda b: (b, 0, 0)),
                pl.BlockSpec((H, C, S), lambda b: (0, 0, 0)),
                pl.BlockSpec((H, C, S), lambda b: (0, 0, 0)),
                pl.BlockSpec((H, C, S), lambda b: (0, 0, 0)),
                pl.BlockSpec((H, S, C), lambda b: (0, 0, 0)),
                pl.BlockSpec((1, C), lambda b: (0, 0)),
            ],
            out_specs=pl.BlockSpec((BB, T, C), lambda b: (b, 0, 0)),
        ),
        # NOTE: if BB is ever scaled up (R >= 256), re-derive the VMEM budget
        # for v7x's 64 MiB and set vmem_limit_bytes explicitly; irrelevant at
        # these sizes.
        compiler_params=pltpu.CompilerParams(dimension_semantics=dim_sem),
    )(x, wq_h, wk_h, wv_h, wp_h, b_proj)


def _reference(x, wk, wq, wv, wp_t, bp):
    """Pure-JAX f32 reference mirroring the PyTorch forward (eval mode)."""
    B, T, C = x.shape
    H, _, S = wk.shape
    outs = []
    for h in range(H):
        k = x @ wk[h]
        q = x @ wq[h]
        v = x @ wv[h]
        wei = (q @ jnp.swapaxes(k, -2, -1)) * (S ** -0.5)
        mask = jnp.tril(jnp.ones((T, T), dtype=bool))
        wei = jnp.where(mask, wei, -jnp.inf)
        wei = jax.nn.softmax(wei, axis=-1)
        outs.append(wei @ v)
    cat = jnp.concatenate(outs, axis=-1)
    return cat @ wp_t + bp[0]


if __name__ == "__main__":
    key = jax.random.PRNGKey(0)
    B, T, C, H, S = 2, BLOCK_SIZE, N_EMBD, NUM_HEADS, HEAD_SIZE

    kx, kk, kq, kv, kp, kb = jax.random.split(key, 6)
    x = jax.random.normal(kx, (B, T, C), dtype=jnp.float32)

    # Linear(no bias) weights: PyTorch stores (out, in); pre-transposed to
    # (in, out) and stacked per head -> (H, C, S).
    wk = jax.random.normal(kk, (H, C, S), dtype=jnp.float32) * 0.1
    wq = jax.random.normal(kq, (H, C, S), dtype=jnp.float32) * 0.1
    wv = jax.random.normal(kv, (H, C, S), dtype=jnp.float32) * 0.1
    # proj: Linear(H*S -> C) with bias; pre-transposed weight (H*S, C).
    wp_t = jax.random.normal(kp, (H * S, C), dtype=jnp.float32) * 0.1
    bp = jax.random.normal(kb, (1, C), dtype=jnp.float32) * 0.1

    out = multi_head_attention(x, wq, wk, wv, wp_t, bp, NUM_HEADS)
    out = jax.block_until_ready(out)

    ref = _reference(x, wk, wq, wv, wp_t, bp)
    # tolerance covers bf16 MXU operands + approx (EUP) softmax reciprocal
    assert jnp.allclose(out, ref, atol=3e-2, rtol=3e-2), "mismatch vs reference"

    print("KERNEL_OK")
</pallas_src>

<mosaic_0001>
module attributes {stable_mosaic.version = 11 : i64} {
  func.func @kernel(%arg0: i32, %arg1: memref<2x8x32xf32, #tpu.memory_space<vmem>>, %arg2: memref<4x32x8xbf16, #tpu.memory_space<vmem>>, %arg3: memref<4x32x8xbf16, #tpu.memory_space<vmem>>, %arg4: memref<4x32x8xbf16, #tpu.memory_space<vmem>>, %arg5: memref<4x8x32xbf16, #tpu.memory_space<vmem>>, %arg6: memref<1x32xf32, #tpu.memory_space<vmem>>, %arg7: memref<2x8x32xf32, #tpu.memory_space<vmem>>) attributes {dimension_semantics = [#tpu.dimension_semantics<arbitrary>], iteration_bounds = array<i64: 1>, scalar_prefetch = 0 : i64, scratch_operands = 0 : i64, tpu.core_type = #tpu.core_type<tc>, window_params = [{transform_indices = @transform_0, window_bounds = array<i64: 2, 8, 32>}, {pipeline_mode = #tpu.pipeline_mode<synchronous>, transform_indices = @transform_1, window_bounds = array<i64: 4, 32, 8>}, {pipeline_mode = #tpu.pipeline_mode<synchronous>, transform_indices = @transform_2, window_bounds = array<i64: 4, 32, 8>}, {pipeline_mode = #tpu.pipeline_mode<synchronous>, transform_indices = @transform_3, window_bounds = array<i64: 4, 32, 8>}, {pipeline_mode = #tpu.pipeline_mode<synchronous>, transform_indices = @transform_4, window_bounds = array<i64: 4, 8, 32>}, {pipeline_mode = #tpu.pipeline_mode<synchronous>, transform_indices = @transform_5, window_bounds = array<i64: 1, 32>}, {transform_indices = @transform_6, window_bounds = array<i64: 2, 8, 32>}]} {
    %c0 = arith.constant 0 : index
    %c0_0 = arith.constant 0 : index
    %c0_1 = arith.constant 0 : index
    %0 = vector.load %arg1[%c0, %c0_0, %c0_1] : memref<2x8x32xf32, #tpu.memory_space<vmem>>, vector<2x8x32xf32>
    %1 = vector.shape_cast %0 : vector<2x8x32xf32> to vector<16x32xf32>
    %2 = arith.truncf %1 : vector<16x32xf32> to vector<16x32xbf16>
    %c0_2 = arith.constant 0 : index
    %c0_3 = arith.constant 0 : index
    %c0_4 = arith.constant 0 : index
    %3 = vector.load %arg2[%c0_2, %c0_3, %c0_4] : memref<4x32x8xbf16, #tpu.memory_space<vmem>>, vector<4x32x8xbf16>
    "tpu.trace_start"() <{level = 10 : i32, message = "rc,hcs->hrs"}> : () -> ()
    %cst = arith.constant dense<0.000000e+00> : vector<4x8x16xf32>
    %4 = tpu.matmul %3, %2, %cst {dimension_numbers = #tpu.dot_dimension_numbers<[1], [1], [0, 2], [0], [0, 0, 0, 2, 1, 0], [], []>} : vector<4x32x8xbf16>, vector<16x32xbf16>, vector<4x8x16xf32> -> vector<4x8x16xf32>
    %5 = tpu.transpose %4, [0, 2, 1] : vector<4x8x16xf32> -> vector<4x16x8xf32>
    "tpu.trace_stop"() : () -> ()
    %c0_5 = arith.constant 0 : index
    %c0_6 = arith.constant 0 : index
    %c0_7 = arith.constant 0 : index
    %6 = vector.load %arg3[%c0_5, %c0_6, %c0_7] : memref<4x32x8xbf16, #tpu.memory_space<vmem>>, vector<4x32x8xbf16>
    "tpu.trace_start"() <{level = 10 : i32, message = "rc,hcs->hrs"}> : () -> ()
    %cst_8 = arith.constant dense<0.000000e+00> : vector<4x8x16xf32>
    %7 = tpu.matmul %6, %2, %cst_8 {dimension_numbers = #tpu.dot_dimension_numbers<[1], [1], [0, 2], [0], [0, 0, 0, 2, 1, 0], [], []>} : vector<4x32x8xbf16>, vector<16x32xbf16>, vector<4x8x16xf32> -> vector<4x8x16xf32>
    %8 = tpu.transpose %7, [0, 2, 1] : vector<4x8x16xf32> -> vector<4x16x8xf32>
    "tpu.trace_stop"() : () -> ()
    %c0_9 = arith.constant 0 : index
    %c0_10 = arith.constant 0 : index
    %c0_11 = arith.constant 0 : index
    %9 = vector.load %arg4[%c0_9, %c0_10, %c0_11] : memref<4x32x8xbf16, #tpu.memory_space<vmem>>, vector<4x32x8xbf16>
    "tpu.trace_start"() <{level = 10 : i32, message = "rc,hcs->hrs"}> : () -> ()
    %cst_12 = arith.constant dense<0.000000e+00> : vector<4x8x16xf32>
    %10 = tpu.matmul %9, %2, %cst_12 {dimension_numbers = #tpu.dot_dimension_numbers<[1], [1], [0, 2], [0], [0, 0, 0, 2, 1, 0], [], []>} : vector<4x32x8xbf16>, vector<16x32xbf16>, vector<4x8x16xf32> -> vector<4x8x16xf32>
    %11 = tpu.transpose %10, [0, 2, 1] : vector<4x8x16xf32> -> vector<4x16x8xf32>
    "tpu.trace_stop"() : () -> ()
    %12 = vector.shape_cast %5 : vector<4x16x8xf32> to vector<8x8x8xf32>
    %13 = arith.truncf %12 : vector<8x8x8xf32> to vector<8x8x8xbf16>
    %14 = vector.shape_cast %8 : vector<4x16x8xf32> to vector<8x8x8xf32>
    %15 = arith.truncf %14 : vector<8x8x8xf32> to vector<8x8x8xbf16>
    %16 = vector.shape_cast %11 : vector<4x16x8xf32> to vector<8x8x8xf32>
    %17 = arith.truncf %16 : vector<8x8x8xf32> to vector<8x8x8xbf16>
    %18 = tpu.iota {dimensions = array<i32: 0>} : vector<8x8xi32>
    %19 = tpu.iota {dimensions = array<i32: 1>} : vector<8x8xi32>
    %20 = arith.cmpi sle, %19, %18 : vector<8x8xi32>
    %cst_13 = arith.constant 0.000000e+00 : f32
    %cst_14 = arith.constant -1.000000e+30 : f32
    %21 = vector.broadcast %cst_13 : f32 to vector<8x8xf32>
    %22 = vector.broadcast %cst_14 : f32 to vector<8x8xf32>
    %23 = arith.select %20, %21, %22 : vector<8x8xi1>, vector<8x8xf32>
    "tpu.trace_start"() <{level = 10 : i32, message = "gts,gus->gtu"}> : () -> ()
    %cst_15 = arith.constant dense<0.000000e+00> : vector<8x8x8xf32>
    %24 = tpu.matmul %13, %15, %cst_15 {dimension_numbers = #tpu.dot_dimension_numbers<[2], [2], [1], [1], [0, 0, 0, 1, 1, 1], [0], [0]>} : vector<8x8x8xbf16>, vector<8x8x8xbf16>, vector<8x8x8xf32> -> vector<8x8x8xf32>
    "tpu.trace_stop"() : () -> ()
    %cst_16 = arith.constant 0.353553385 : f32
    %25 = vector.broadcast %cst_16 : f32 to vector<8x8x8xf32>
    %26 = arith.mulf %24, %25 : vector<8x8x8xf32>
    %27 = vector.shape_cast %23 : vector<8x8xf32> to vector<1x8x8xf32>
    %28 = vector.broadcast %27 : vector<1x8x8xf32> to vector<8x8x8xf32>
    %29 = arith.addf %26, %28 : vector<8x8x8xf32>
    %cst_17 = arith.constant dense<0xFF800000> : vector<8x8xf32>
    %30 = vector.multi_reduction <maximumf>, %29, %cst_17 [2] : vector<8x8x8xf32> to vector<8x8xf32>
    %31 = vector.shape_cast %30 : vector<8x8xf32> to vector<8x8x1xf32>
    %32 = vector.broadcast %31 : vector<8x8x1xf32> to vector<8x8x8xf32>
    %33 = arith.subf %29, %32 : vector<8x8x8xf32>
    %34 = math.exp %33 : vector<8x8x8xf32>
    %cst_18 = arith.constant dense<0.000000e+00> : vector<8x8xf32>
    %35 = vector.multi_reduction <add>, %34, %cst_18 [2] : vector<8x8x8xf32> to vector<8x8xf32>
    %36 = vector.shape_cast %35 : vector<8x8xf32> to vector<8x8x1xf32>
    %37 = tpu.reciprocal %36 {approx = true} : vector<8x8x1xf32> -> vector<8x8x1xf32>
    %38 = vector.broadcast %37 : vector<8x8x1xf32> to vector<8x8x8xf32>
    %39 = arith.mulf %34, %38 : vector<8x8x8xf32>
    %40 = arith.truncf %39 : vector<8x8x8xf32> to vector<8x8x8xbf16>
    "tpu.trace_start"() <{level = 10 : i32, message = "gtu,gus->gts"}> : () -> ()
    %cst_19 = arith.constant dense<0.000000e+00> : vector<8x8x8xf32>
    %41 = tpu.matmul %40, %17, %cst_19 {dimension_numbers = #tpu.dot_dimension_numbers<[2], [1], [1], [2], [0, 0, 0, 1, 1, 2], [0], [0]>} : vector<8x8x8xbf16>, vector<8x8x8xbf16>, vector<8x8x8xf32> -> vector<8x8x8xf32>
    "tpu.trace_stop"() : () -> ()
    %42 = vector.shape_cast %41 : vector<8x8x8xf32> to vector<4x16x8xf32>
    %43 = arith.truncf %42 : vector<4x16x8xf32> to vector<4x16x8xbf16>
    %c0_20 = arith.constant 0 : index
    %c0_21 = arith.constant 0 : index
    %c0_22 = arith.constant 0 : index
    %44 = vector.load %arg5[%c0_20, %c0_21, %c0_22] : memref<4x8x32xbf16, #tpu.memory_space<vmem>>, vector<4x8x32xbf16>
    "tpu.trace_start"() <{level = 10 : i32, message = "hrs,hsc->hrc"}> : () -> ()
    %cst_23 = arith.constant dense<0.000000e+00> : vector<4x16x32xf32>
    %45 = tpu.matmul %43, %44, %cst_23 {dimension_numbers = #tpu.dot_dimension_numbers<[2], [1], [1], [2], [0, 0, 0, 1, 1, 2], [0], [0]>} : vector<4x16x8xbf16>, vector<4x8x32xbf16>, vector<4x16x32xf32> -> vector<4x16x32xf32>
    "tpu.trace_stop"() : () -> ()
    %cst_24 = arith.constant dense<0.000000e+00> : vector<16x32xf32>
    %46 = vector.multi_reduction <add>, %45, %cst_24 [0] : vector<4x16x32xf32> to vector<16x32xf32>
    %c0_25 = arith.constant 0 : index
    %c0_26 = arith.constant 0 : index
    %47 = vector.load %arg6[%c0_25, %c0_26] : memref<1x32xf32, #tpu.memory_space<vmem>>, vector<1x32xf32>
    %48 = vector.broadcast %47 : vector<1x32xf32> to vector<16x32xf32>
    %49 = arith.addf %46, %48 : vector<16x32xf32>
    %50 = vector.shape_cast %49 : vector<16x32xf32> to vector<2x8x32xf32>
    %c0_27 = arith.constant 0 : index
    %c0_28 = arith.constant 0 : index
    %c0_29 = arith.constant 0 : index
    %51 = vector.load %arg7[%c0_27, %c0_28, %c0_29] : memref<2x8x32xf32, #tpu.memory_space<vmem>>, vector<2x8x32xf32>
    tpu.vector_store %arg7[%c0_27, %c0_28, %c0_29], %50 {strides = array<i32>} : memref<2x8x32xf32, #tpu.memory_space<vmem>>, vector<2x8x32xf32>,
    return
  }
  func.func @transform_0(%arg0: i32) -> (i32, i32, i32) {
    %c0_i32 = arith.constant 0 : i32
    %c0_i32_0 = arith.constant 0 : i32
    %c0_i32_1 = arith.constant 0 : i32
    return %arg0, %c0_i32, %c0_i32_0 : i32, i32, i32
  }
  func.func @transform_1(%arg0: i32) -> (i32, i32, i32) {
    %c0_i32 = arith.constant 0 : i32
    %c0_i32_0 = arith.constant 0 : i32
    %c0_i32_1 = arith.constant 0 : i32
    %c0_i32_2 = arith.constant 0 : i32
    return %c0_i32, %c0_i32_0, %c0_i32_1 : i32, i32, i32
  }
  func.func @transform_2(%arg0: i32) -> (i32, i32, i32) {
    %c0_i32 = arith.constant 0 : i32
    %c0_i32_0 = arith.constant 0 : i32
    %c0_i32_1 = arith.constant 0 : i32
    %c0_i32_2 = arith.constant 0 : i32
    return %c0_i32, %c0_i32_0, %c0_i32_1 : i32, i32, i32
  }
  func.func @transform_3(%arg0: i32) -> (i32, i32, i32) {
    %c0_i32 = arith.constant 0 : i32
    %c0_i32_0 = arith.constant 0 : i32
    %c0_i32_1 = arith.constant 0 : i32
    %c0_i32_2 = arith.constant 0 : i32
    return %c0_i32, %c0_i32_0, %c0_i32_1 : i32, i32, i32
  }
  func.func @transform_4(%arg0: i32) -> (i32, i32, i32) {
    %c0_i32 = arith.constant 0 : i32
    %c0_i32_0 = arith.constant 0 : i32
    %c0_i32_1 = arith.constant 0 : i32
    %c0_i32_2 = arith.constant 0 : i32
    return %c0_i32, %c0_i32_0, %c0_i32_1 : i32, i32, i32
  }
  func.func @transform_5(%arg0: i32) -> (i32, i32) {
    %c0_i32 = arith.constant 0 : i32
    %c0_i32_0 = arith.constant 0 : i32
    %c0_i32_1 = arith.constant 0 : i32
    return %c0_i32, %c0_i32_0 : i32, i32
  }
  func.func @transform_6(%arg0: i32) -> (i32, i32, i32) {
    %c0_i32 = arith.constant 0 : i32
    %c0_i32_0 = arith.constant 0 : i32
    %c0_i32_1 = arith.constant 0 : i32
    return %arg0, %c0_i32, %c0_i32_0 : i32, i32, i32
  }
}

</mosaic_0001>

<bundles_post_ra>
// kernel: tpu_custom_call.1
= control target key start
LH: loop header
LB: loop body
LE: loop exit
PB: predicated region body
PF: predicated region fallthrough
CT: control target
= control target key end

     0   :  { %vm166_vm0 = vcmask 261120   ;;  %s2797_s0 = inlined_call_operand.vmem [shape: f32[2,8,32], index: 0, kind: input, shape index: {}]   ;;  %s2798_s1 = inlined_call_operand.vmem [shape: bf16[4,32,8], index: 1, kind: input, shape index: {}]   ;;  %s2799_s2 = inlined_call_operand.vmem [shape: bf16[4,32,8], index: 2, kind: input, shape index: {}]   ;;  %s2800_s3 = inlined_call_operand.vmem [shape: bf16[4,32,8], index: 3, kind: input, shape index: {}]   ;;  %s2801_s4 = inlined_call_operand.vmem [shape: bf16[4,8,32], index: 4, kind: input, shape index: {}]   ;;  %s2802_s5 = inlined_call_operand.vmem [shape: f32[1,32], index: 5, kind: input, shape index: {}]   ;;  %s2803_s6 = inlined_call_operand.hbm [shape: f32[2,8,32], index: 6, kind: output, shape index: {}]  }
   0x1   :  { %v2402_v0 = vld [vmem:[%s2799_s2 + $0x10] sm:$0xff]   ;;  %v2403_v1 = vld [vmem:[%s2799_s2] sm:$0xff]   ;;  %v2404_v2 = vld [vmem:[%s2799_s2 + $0x18] sm:$0xff]  }
   0x2   :  { %433 = vxpose.xlu1.c.b16.start [1/2] (short) (narrow) %v2402_v0, 16  ;;  %417 = vxpose.xlu0.c.b16.start [1/2] (short) (narrow) %v2403_v1, 16  ;;  %v2405_v3 = vld [vmem:[%s2799_s2 + $0x8] sm:$0xff]   ;;  %v2406_v4 = vld [vmem:[%s2799_s2 + $0x30] sm:$0xff]   ;;  %v2407_v5 = vld [vmem:[%s2799_s2 + $0x20] sm:$0xff]  }
   0x3   :  { %v2408_v6 = vld [vmem:[%s2799_s2 + $0x38] sm:$0xff]   ;;  %v2409_v7 = vld [vmem:[%s2799_s2 + $0x28] sm:$0xff]   ;;  %v2410_v8 = vld [vmem:[%s2798_s1 + $0x10] sm:$0xff]  }
   0x4   :  { %v2411_v9 = vld [vmem:[%s2798_s1] sm:$0xff]   ;;  %v26_v11 = vld [vmem:[%s2797_s0 + $0x8] sm:$0xff]  ;;  %v2412_v13 = vld [vmem:[%s2798_s1 + $0x18] sm:$0xff]  }
   0x5   :  { %v25_v10 = vld [vmem:[%s2797_s0] sm:$0xff]  ;;  %v2413_v14 = vld [vmem:[%s2798_s1 + $0x8] sm:$0xff]   ;;  %v2414_v16 = vld [vmem:[%s2798_s1 + $0x30] sm:$0xff]  }
   0x6   :  { %434 = vxpose.xlu1.c.b16.end [2/2] (short) (narrow) %v2404_v2, 16  ;;  %418 = vxpose.xlu0.c.b16.end [2/2] (short) (narrow) %v2405_v3, 16  ;;  %v27_v12 = vpack.c.bf16 %v26_v11, %v25_v10  ;;  %v2415_v17 = vld [vmem:[%s2798_s1 + $0x20] sm:$0xff]  }
   0x8   :  { %2357 = vmatprep.subr.msk.bf16.mxu1 %vm166_vm0, %v27_v12  ;;  %v174_v15 = vsel %vm166_vm0, %v27_v12, 0  ;;  %2356 = vmatprep.subr.msk.bf16.mxu0 %vm166_vm0, %v27_v12 }
   0x9   :  { %2225 = vmatpush3.bf16.xpose.msra.mxu1 %v174_v15  ;;  %2219 = vmatpush3.bf16.xpose.msra.mxu0 %v174_v15 }
   0xa   :  { %465 = vxpose.xlu1.c.b16.start [1/2] (short) (narrow) %v2406_v4, 16  ;;  %449 = vxpose.xlu0.c.b16.start [1/2] (short) (narrow) %v2407_v5, 16 }
   0xb   :  { %2358 = vmatprep.subr.msk.bf16.mxu0 %vm166_vm0, %v27_v12 }
   0xe   :  { %466 = vxpose.xlu1.c.b16.end [2/2] (short) (narrow) %v2408_v6, 16  ;;  %450 = vxpose.xlu0.c.b16.end [2/2] (short) (narrow) %v2409_v7, 16 }
  0x12   :  { %108 = vxpose.xlu1.c.b16.start [1/2] (short) (narrow) %v2410_v8, 16  ;;  %92 = vxpose.xlu0.c.b16.start [1/2] (short) (narrow) %v2411_v9, 16 }
  0x16   :  { %109 = vxpose.xlu1.c.b16.end [2/2] (short) (narrow) %v2412_v13, 16  ;;  %93 = vxpose.xlu0.c.b16.end [2/2] (short) (narrow) %v2413_v14, 16 }
  0x17   :  { %11 = vsyncpa [#allocation3], 0  ;;  %v2416_v18 = vld [vmem:[%s2798_s1 + $0x38] sm:$0xff]   ;;  %v2417_v19 = vld [vmem:[%s2798_s1 + $0x28] sm:$0xff]   ;;  %v2480_v48 = vmov 0.0   ;;  %vm2481_vm1 = vmmov 0  }
  0x18   :  { %v2420_v20 = vld [vmem:[%s2800_s3 + $0x10] sm:$0xff]   ;;  %v2418_v21 = vld [vmem:[%s2800_s3] sm:$0xff]   ;;  %v2419_v22 = vld [vmem:[%s2800_s3 + $0x8] sm:$0xff]   ;;  %2236 = vmatprep.subr.bf16.mxu1 %v2480_v48  ;;  %vm1025_vm2 = vcmask 64512   ;;  %vm1509_vm4 = vcmask 1043456   ;;  %s2483_s28 = smov [#allocation2]  }
  0x19   :  { %v2421_v23 = vld [vmem:[%s2800_s3 + $0x20] sm:$0xff]   ;;  %v2422_v36 = vld [vmem:[%s2800_s3 + $0x18] sm:$0xff]   ;;  %v2423_v37 = vld [vmem:[%s2800_s3 + $0x28] sm:$0xff]   ;;  %s2101_s29 = sshll.u32 %s2483_s28, 4  ;;  %s2102_s29 = int_to_ptr.vmem [resolvable:$true] %s2101_s29 }
  0x1a   :  { %140 = vxpose.xlu1.c.b16.start [1/2] (short) (narrow) %v2414_v16, 16  ;;  %124 = vxpose.xlu0.c.b16.start [1/2] (short) (narrow) %v2415_v17, 16  ;;  %v2424_v38 = vld [vmem:[%s2800_s3 + $0x30] sm:$0xff]   ;;  %v2425_v39 = vld [vmem:[%s2800_s3 + $0x38] sm:$0xff]   ;;  %s2458_s30 = scalar_lea.vmem %s2102_s29, 256  ;;  %p2463_p1 = scmp.lt.s32.totalorder %s2102_s29, %s2102_s29 }
  0x1b   :  { %p2459_p0 = scmp.ne.s32.totalorder %s2102_s29, %s2458_s30  ;;  %p2464_p2 = scmp.lt.s32.totalorder %s2458_s30, %s2458_s30 }
  0x1d   :  { %p2465_p3 = por %p2464_p2, %p2463_p1 }
  0x1e   :  { %141 = vxpose.xlu1.c.b16.end [2/2] (short) (narrow) %v2416_v18, 16  ;;  %125 = vxpose.xlu0.c.b16.end [2/2] (short) (narrow) %v2417_v19, 16 }
  0x1f   :  { %p2466_p4 = pnand %p2465_p3, %p2459_p0 }
  0x22   :  { %754 = vxpose.xlu1.c.b16.start [1/2] (short) (narrow) %v2420_v20, 16  ;;  %738 = vxpose.xlu0.c.b16.start [1/2] (short) (narrow) %v2418_v21, 16 }
  0x26   :  { %739 = vxpose.xlu0.c.b16.end [2/2] (short) (narrow) %v2419_v22, 16  ;;  %755 = vxpose.xlu1.c.b16.end [2/2] (short) (narrow) %v2422_v36, 16 }
  0x2a   :  { %770 = vxpose.xlu0.c.b16.start [1/2] (short) (narrow) %v2421_v23, 16  ;;  %786 = vxpose.xlu1.c.b16.start [1/2] (short) (narrow) %v2424_v38, 16 }
  0x2e   :  { %771 = vxpose.xlu0.c.b16.end [2/2] (short) (narrow) %v2423_v37, 16  ;;  %787 = vxpose.xlu1.c.b16.end [2/2] (short) (narrow) %v2425_v39, 16 }
  0x64   :  { %v441_v24 = vpop.trf.xlu1  ;;  %v425_v25 = vpop.trf.xlu0 }
  0x65   :  { %v2132_v26 = vcombine.low %v425_v25, %v441_v24 }
  0x67   :  { %2226 = vmatprep.mubr.msk.bf16.mxu1 %vm166_vm0, %v2132_v26 }
  0x6c   :  { %v473_v27 = vpop.trf.xlu1  ;;  %v457_v28 = vpop.trf.xlu0 }
  0x6d   :  { %v2133_v29 = vcombine.low %v457_v28, %v473_v27 }
  0x6f   :  { %2227 = vmatmul.mubr.msk.bf16.vlgmr.msra.gmra.mxu1 %vm166_vm0, %v2133_v29 }
  0x70   :  { %2238 = vmatprep.mubr.msk.bf16.mxu1 %vm2481_vm1, %v2480_v48 }
  0x74   :  { %v116_v30 = vpop.trf.xlu1  ;;  %v100_v31 = vpop.trf.xlu0 }
  0x75   :  { %v2120_v32 = vcombine.low %v100_v31, %v116_v30 }
  0x77   :  { %2220 = vmatprep.mubr.msk.bf16.mxu0 %vm166_vm0, %v2120_v32 }
  0x7c   :  { %v148_v33 = vpop.trf.xlu1  ;;  %v132_v34 = vpop.trf.xlu0 }
  0x7d   :  { %v2121_v35 = vcombine.low %v132_v34, %v148_v33 }
  0x7f   :  { %2221 = vmatmul.mubr.msk.bf16.vlgmr.msra.gmra.mxu0 %vm166_vm0, %v2121_v35 }
  0x80   :  { %2231 = vmatpush3.bf16.xpose.msra.mxu0 %v174_v15 }
  0x81   :  { %2242 = vmatprep.subr.bf16.mxu0 %v2480_v48 }
  0x84   :  { %v762_v40 = vpop.trf.xlu1  ;;  %v746_v41 = vpop.trf.xlu0 }
  0x85   :  { %v2144_v42 = vcombine.low %v746_v41, %v762_v40  ;;  %v1019_v40 = vlaneseq }
  0x87   :  { %2232 = vmatprep.mubr.msk.bf16.mxu0 %vm166_vm0, %v2144_v42  ;;  %v1020_v42 = vshrl.u32 %v1019_v40, 7 }
  0x8c   :  { %v778_v43 = vpop.trf.xlu0  ;;  %v794_v44 = vpop.trf.xlu1 }
  0x8d   :  { %v2145_v45 = vcombine.low %v778_v43, %v794_v44  ;;  %v1022_v43 = vand.u32 127, %v1019_v40 }
  0x8f   :  { %2233 = vmatmul.mubr.msk.bf16.vlgmr.msra.gmra.mxu0 %vm166_vm0, %v2145_v45  ;;  %vm1023_vm3 = vcmp.le.s32.totalorder %v1022_v43, %v1020_v42 }
  0x90   :  { %2244 = vmatprep.mubr.msk.bf16.mxu0 %vm2481_vm1, %v2480_v48 }
 0x12f   :  { %v2228_v46 = vpop.f32.mrf.mxu1 }
 0x131   :  { %v531_v47 = vpop.f32.mrf.mxu1 }
 0x132   :  { %546 = vxpose.xlu0.b32.start.end [1/1] (short) (narrow) %v531_v47, 16  ;;  %v2482_v47 = vmov -1e+30  }
 0x133   :  { %v2229_v49 = vpop.f32.mrf.mxu1 }
 0x135   :  { %v534_v51 = vpop.f32.mrf.mxu1 }
 0x13f   :  { %v2222_v50 = vpop.f32.mrf.mxu0 }
 0x140   :  { %v2390_v57 = vpack.i.bf16 %v2229_v49, %v2222_v50  ;;  %v1024_v49 = vsel %vm1023_vm3, 0.0, %v2482_v47 }
 0x141   :  { %v210_v52 = vpop.f32.mrf.mxu0 }
 0x142   :  { %v2366_v53 = vpack.i.bf16 %v534_v51, %v210_v52 }
 0x143   :  { %v2223_v54 = vpop.f32.mrf.mxu0 }
 0x144   :  { %2367 = vxpose.xlu1.b32.start.end [1/1] (short) (narrow) %v2366_v53, 16 }
 0x145   :  { %v213_v55 = vpop.f32.mrf.mxu0 }
 0x146   :  { %v2378_v56 = vpack.i.bf16 %v2228_v46, %v213_v55 }
 0x148   :  { %2379 = vxpose.xlu0.b32.start.end [1/1] (short) (narrow) %v2378_v56, 16 }
 0x149   :  { %321 = vxpose.xlu1.b32.start.end [1/1] (short) (narrow) %v2223_v54, 16 }
 0x14d   :  { %2391 = vxpose.xlu0.b32.start.end [1/1] (short) (narrow) %v2390_v57, 16 }
 0x14f   :  { %v2655_v41 = vpop.f32.mrf.mxu0 }
 0x151   :  { %v2657_v44 = vpop.f32.mrf.mxu0 }
 0x153   :  { %v2659_v45 = vpop.f32.mrf.mxu0 }
 0x155   :  { %v2661_v51 = vpop.f32.mrf.mxu0 }
 0x1ae   :  { %v562_v58 = vpop.trf.xlu0 }
 0x1af   :  { %v1003_v59 = vpack.c.bf16 %v562_v58, %v562_v58 }
 0x1b1   :  { %v1030_v60 = vsel %vm1025_vm2, %v1003_v59, 0 }
 0x1b2   :  { %2237 = vmatpush3.bf16.xpose.msra.mxu1 %v1030_v60  ;;  %v563_v61 = vpop.trf.xlu0 }
 0x1b3   :  { %v1004_v62 = vpack.c.bf16 %v563_v61, %v563_v61  ;;  %2248 = vmatprep.subr.bf16.mxu1 %v2480_v48 }
 0x1b5   :  { %v1076_v63 = vsel %vm1025_vm2, %v1004_v62, 0 }
 0x1b6   :  { %2243 = vmatpush3.bf16.xpose.msra.mxu0 %v1076_v63 }
 0x1b7   :  { %2254 = vmatprep.subr.bf16.mxu0 %v2480_v48 }
 0x1c0   :  { %v2368_v0 = vpop.trf.xlu1 }
 0x1c1   :  { %v2372_v1 = vunpack.i.h.bf16 %v2368_v0  ;;  %v2369_v2 = vunpack.i.l.bf16 %v2368_v0 }
 0x1c3   :  { %v995_v3 = vpack.c.bf16 %v2369_v2, %v2369_v2  ;;  %v1005_v4 = vpack.c.bf16 %v2372_v1, %v2372_v1 }
 0x1c4   :  { %v2373_v5 = vpop.trf.xlu1  ;;  %v2380_v6 = vpop.trf.xlu0 }
 0x1c5   :  { %v2377_v7 = vunpack.i.h.bf16 %v2373_v5  ;;  %v2374_v8 = vunpack.i.l.bf16 %v2373_v5  ;;  %2239 = vmatmul.mubr.msk.bf16.vlgmr.msra.gmra.mxu1 %vm1025_vm2, %v995_v3  ;;  %v1122_v9 = vsel %vm1025_vm2, %v1005_v4, 0  ;;  %v2384_v10 = vunpack.i.h.bf16 %v2380_v6 }
 0x1c6   :  { %2250 = vmatprep.mubr.msk.bf16.mxu1 %vm2481_vm1, %v2480_v48  ;;  %2249 = vmatpush3.bf16.xpose.msra.mxu1 %v1122_v9  ;;  %v2381_v12 = vunpack.i.l.bf16 %v2380_v6 }
 0x1c7   :  { %v996_v11 = vpack.c.bf16 %v2374_v8, %v2374_v8  ;;  %v1006_v13 = vpack.c.bf16 %v2377_v7, %v2377_v7  ;;  %2260 = vmatprep.subr.bf16.mxu1 %v2480_v48  ;;  %v1007_v15 = vpack.c.bf16 %v2384_v10, %v2384_v10 }
 0x1c8   :  { %v2385_v14 = vpop.trf.xlu0  ;;  %v997_v18 = vpack.c.bf16 %v2381_v12, %v2381_v12  ;;  %v337_v34 = vpop.trf.xlu1 }
 0x1c9   :  { %2245 = vmatmul.mubr.msk.bf16.vlgmr.msra.gmra.mxu0 %vm1025_vm2, %v996_v11  ;;  %v1168_v16 = vsel %vm1025_vm2, %v1006_v13, 0  ;;  %v2389_v17 = vunpack.i.h.bf16 %v2385_v14  ;;  %v2386_v19 = vunpack.i.l.bf16 %v2385_v14  ;;  %v1214_v21 = vsel %vm1025_vm2, %v1007_v15, 0 }
 0x1ca   :  { %2255 = vmatpush3.bf16.xpose.msra.mxu0 %v1168_v16  ;;  %2256 = vmatprep.mubr.msk.bf16.mxu0 %vm2481_vm1, %v2480_v48  ;;  %v1001_v37 = vpack.c.bf16 %v337_v34, %v337_v34 }
 0x1cb   :  { %2266 = vmatprep.subr.bf16.mxu0 %v2480_v48  ;;  %v1008_v20 = vpack.c.bf16 %v2389_v17, %v2389_v17  ;;  %v998_v23 = vpack.c.bf16 %v2386_v19, %v2386_v19 }
 0x1cc   :  { %v2392_v22 = vpop.trf.xlu0  ;;  %v338_v38 = vpop.trf.xlu1 }
 0x1cd   :  { %v2396_v24 = vunpack.i.h.bf16 %v2392_v22  ;;  %2251 = vmatmul.mubr.msk.bf16.vlgmr.msra.gmra.mxu1 %vm1025_vm2, %v997_v18  ;;  %v2393_v25 = vunpack.i.l.bf16 %v2392_v22  ;;  %v1260_v26 = vsel %vm1025_vm2, %v1008_v20, 0  ;;  %v1002_v39 = vpack.c.bf16 %v338_v38, %v338_v38 }
 0x1ce   :  { %2261 = vmatpush3.bf16.xpose.msra.mxu1 %v1214_v21  ;;  %2262 = vmatprep.mubr.msk.bf16.mxu1 %vm2481_vm1, %v2480_v48 }
 0x1cf   :  { %2272 = vmatprep.subr.bf16.mxu1 %v2480_v48  ;;  %v1009_v28 = vpack.c.bf16 %v2396_v24, %v2396_v24  ;;  %v999_v31 = vpack.c.bf16 %v2393_v25, %v2393_v25 }
 0x1d0   :  { %v2397_v27 = vpop.trf.xlu0 }
 0x1d1   :  { %2257 = vmatmul.mubr.msk.bf16.vlgmr.msra.gmra.mxu0 %vm1025_vm2, %v998_v23  ;;  %v2401_v29 = vunpack.i.h.bf16 %v2397_v27  ;;  %v2398_v30 = vunpack.i.l.bf16 %v2397_v27  ;;  %v1306_v33 = vsel %vm1025_vm2, %v1009_v28, 0 }
 0x1d2   :  { %2267 = vmatpush3.bf16.xpose.msra.mxu0 %v1260_v26  ;;  %2268 = vmatprep.mubr.msk.bf16.mxu0 %vm2481_vm1, %v2480_v48 }
 0x1d3   :  { %2278 = vmatprep.subr.bf16.mxu0 %v2480_v48  ;;  %v1010_v32 = vpack.c.bf16 %v2401_v29, %v2401_v29  ;;  %v1000_v35 = vpack.c.bf16 %v2398_v30, %v2398_v30 }
 0x1d5   :  { %2263 = vmatmul.mubr.msk.bf16.vlgmr.msra.gmra.mxu1 %vm1025_vm2, %v999_v31  ;;  %v1352_v36 = vsel %vm1025_vm2, %v1010_v32, 0 }
 0x1d6   :  { %2273 = vmatpush3.bf16.xpose.msra.mxu1 %v1306_v33  ;;  %2274 = vmatprep.mubr.msk.bf16.mxu1 %vm2481_vm1, %v2480_v48 }
 0x1d7   :  { %2284 = vmatprep.subr.bf16.mxu1 %v2480_v48 }
 0x1d9   :  { %2269 = vmatmul.mubr.msk.bf16.vlgmr.msra.gmra.mxu0 %vm1025_vm2, %v1000_v35 }
 0x1da   :  { %2279 = vmatpush3.bf16.xpose.msra.mxu0 %v1352_v36  ;;  %2280 = vmatprep.mubr.msk.bf16.mxu0 %vm2481_vm1, %v2480_v48 }
 0x1db   :  { %2290 = vmatprep.subr.bf16.mxu0 %v2480_v48 }
 0x1dd   :  { %2275 = vmatmul.mubr.msk.bf16.vlgmr.msra.gmra.mxu1 %vm1025_vm2, %v1001_v37 }
 0x1de   :  { %2286 = vmatprep.mubr.msk.bf16.mxu1 %vm2481_vm1, %v2480_v48 }
 0x1e1   :  { %2281 = vmatmul.mubr.msk.bf16.vlgmr.msra.gmra.mxu0 %vm1025_vm2, %v1002_v39 }
 0x1e2   :  { %2292 = vmatprep.mubr.msk.bf16.mxu0 %vm2481_vm1, %v2480_v48 }
 0x285   :  { %v1066_v46 = vpop.f32.mrf.mxu1 }
 0x286   :  { %v1394_v50 = vmul.f32 0.35355338, %v1066_v46 }
 0x287   :  { %v2240_v52 = vpop.f32.mrf.mxu1 }
 0x288   :  { %v2663_v53 = vadd.f32 %v1394_v50, %v1024_v49 }
 0x289   :  { %v1069_v54 = vpop.f32.mrf.mxu1  ;;  %v1112_v55 = vpop.f32.mrf.mxu0 }
 0x28a   :  { %v1395_v56 = vmul.f32 0.35355338, %v1112_v55  ;;  %v1410_v57 = vsel %vm1025_vm2, %v2663_v53, -inf }
 0x28b   :  { %v2241_v58 = vpop.f32.mrf.mxu1  ;;  %1411 = vmax.xlane.f32.xlu0 %v1410_v57  ;;  %v2246_v59 = vpop.f32.mrf.mxu0 }
 0x28c   :  { %v1403_v60 = vadd.f32 %v1395_v56, %v1024_v49 }
 0x28d   :  { %v1115_v61 = vpop.f32.mrf.mxu0  ;;  %v1158_v62 = vpop.f32.mrf.mxu1 }
 0x28e   :  { %v1413_v63 = vsel %vm1025_vm2, %v1403_v60, -inf  ;;  %v1396_v0 = vmul.f32 0.35355338, %v1158_v62 }
 0x28f   :  { %1414 = vmax.xlane.f32.xlu1 %v1413_v63  ;;  %v2247_v1 = vpop.f32.mrf.mxu0  ;;  %v2252_v2 = vpop.f32.mrf.mxu1 }
 0x290   :  { %v1404_v4 = vadd.f32 %v1396_v0, %v1024_v49 }
 0x291   :  { %v1204_v3 = vpop.f32.mrf.mxu0  ;;  %v1161_v5 = vpop.f32.mrf.mxu1 }
 0x292   :  { %v1397_v6 = vmul.f32 0.35355338, %v1204_v3  ;;  %v1416_v7 = vsel %vm1025_vm2, %v1404_v4, -inf }
 0x293   :  { %v2258_v8 = vpop.f32.mrf.mxu0  ;;  %v2253_v9 = vpop.f32.mrf.mxu1  ;;  %1417 = vmax.xlane.f32.xlu1 %v1416_v7 }
 0x294   :  { %v1405_v10 = vadd.f32 %v1397_v6, %v1024_v49 }
 0x295   :  { %v1207_v11 = vpop.f32.mrf.mxu0  ;;  %v1250_v12 = vpop.f32.mrf.mxu1 }
 0x296   :  { %v1419_v13 = vsel %vm1025_vm2, %v1405_v10, -inf  ;;  %v1398_v14 = vmul.f32 0.35355338, %v1250_v12 }
 0x297   :  { %v2259_v15 = vpop.f32.mrf.mxu0  ;;  %v2264_v16 = vpop.f32.mrf.mxu1  ;;  %1420 = vmax.xlane.f32.xlu1 %v1419_v13 }
 0x298   :  { %v2670_v18 = vadd.f32 %v1398_v14, %v1024_v49 }
 0x299   :  { %v1296_v17 = vpop.f32.mrf.mxu0  ;;  %v1253_v19 = vpop.f32.mrf.mxu1 }
 0x29a   :  { %v1399_v20 = vmul.f32 0.35355338, %v1296_v17  ;;  %v1422_v21 = vsel %vm1025_vm2, %v2670_v18, -inf }
 0x29b   :  { %v2270_v22 = vpop.f32.mrf.mxu0  ;;  %1423 = vmax.xlane.f32.xlu0 %v1422_v21  ;;  %v2265_v23 = vpop.f32.mrf.mxu1 }
 0x29c   :  { %v1407_v24 = vadd.f32 %v1399_v20, %v1024_v49 }
 0x29d   :  { %v1299_v25 = vpop.f32.mrf.mxu0  ;;  %v1342_v26 = vpop.f32.mrf.mxu1 }
 0x29e   :  { %v1425_v27 = vsel %vm1025_vm2, %v1407_v24, -inf  ;;  %v1400_v28 = vmul.f32 0.35355338, %v1342_v26 }
 0x29f   :  { %1426 = vmax.xlane.f32.xlu1 %v1425_v27  ;;  %v2271_v29 = vpop.f32.mrf.mxu0  ;;  %v2276_v30 = vpop.f32.mrf.mxu1 }
 0x2a0   :  { %v1408_v32 = vadd.f32 %v1400_v28, %v1024_v49 }
 0x2a1   :  { %v1388_v31 = vpop.f32.mrf.mxu0  ;;  %v1345_v34 = vpop.f32.mrf.mxu1 }
 0x2a2   :  { %v1401_v33 = vmul.f32 0.35355338, %v1388_v31  ;;  %v1428_v35 = vsel %vm1025_vm2, %v1408_v32, -inf }
 0x2a3   :  { %v2282_v36 = vpop.f32.mrf.mxu0  ;;  %1429 = vmax.xlane.f32.xlu0 %v1428_v35  ;;  %v2277_v38 = vpop.f32.mrf.mxu1 }
 0x2a4   :  { %v1409_v37 = vadd.f32 %v1401_v33, %v1024_v49 }
 0x2a5   :  { %v1391_v39 = vpop.f32.mrf.mxu0 }
 0x2a6   :  { %v1431_v40 = vsel %vm1025_vm2, %v1409_v37, -inf }
 0x2a7   :  { %1432 = vmax.xlane.f32.xlu1 %v1431_v40  ;;  %v2283_v42 = vpop.f32.mrf.mxu0 }
 0x314   :  { %v1412_v43 = vpop.xlane.xlu0 %1411 }
 0x315   :  { %v1434_v46 = vsub.f32 %v2663_v53, %v1412_v43 }
 0x317   :  { %v1442_v47 = vmul.f32 1.442695, %v1434_v46 }
 0x318   :  { %v1415_v50 = vpop.xlane.xlu1 %1414 }
 0x319   :  { %2426 = vpow2.f32 %v1442_v47  ;;  %v1435_v52 = vsub.f32 %v1403_v60, %v1415_v50 }
 0x31b   :  { %v1444_v54 = vmul.f32 1.442695, %v1435_v52 }
 0x31c   :  { %v1418_v55 = vpop.xlane.xlu1 %1417 }
 0x31d   :  { %2428 = vpow2.f32 %v1444_v54  ;;  %v1436_v56 = vsub.f32 %v1404_v4, %v1418_v55 }
 0x31f   :  { %v1446_v57 = vmul.f32 1.442695, %v1436_v56 }
 0x320   :  { %v1421_v58 = vpop.xlane.xlu1 %1420 }
 0x321   :  { %2430 = vpow2.f32 %v1446_v57  ;;  %v1437_v49 = vsub.f32 %v1405_v10, %v1421_v58 }
 0x323   :  { %v1448_v59 = vmul.f32 1.442695, %v1437_v49 }
 0x324   :  { %v1424_v13 = vpop.xlane.xlu0 %1423 }
 0x325   :  { %2432 = vpow2.f32 %v1448_v59  ;;  %v1438_v14 = vsub.f32 %v2670_v18, %v1424_v13 }
 0x326   :  { %v2427_v61 = vpop.eup %2426 }
 0x327   :  { %v1458_v62 = vsel %vm1025_vm2, %v2427_v61, 0.0  ;;  %v1450_v16 = vmul.f32 1.442695, %v1438_v14 }
 0x328   :  { %1459 = vadd.xlane.f32.xlu0 %v1458_v62  ;;  %v1427_v63 = vpop.xlane.xlu1 %1426 }
 0x329   :  { %v1439_v53 = vsub.f32 %v1407_v24, %v1427_v63 }
 0x32a   :  { %v2429_v0 = vpop.eup %2428 }
 0x32b   :  { %v1452_v1 = vmul.f32 1.442695, %v1439_v53  ;;  %v1461_v60 = vsel %vm1025_vm2, %v2429_v0, 0.0 }
 0x32c   :  { %1462 = vadd.xlane.f32.xlu1 %v1461_v60  ;;  %v1430_v15 = vpop.xlane.xlu0 %1429 }
 0x32d   :  { %2434 = vpow2.f32 %v1452_v1  ;;  %v1440_v17 = vsub.f32 %v1408_v32, %v1430_v15 }
 0x32e   :  { %v2680_v2 = vpop.eup %2430 }
 0x32f   :  { %v1464_v3 = vsel %vm1025_vm2, %v2680_v2, 0.0  ;;  %v1454_v19 = vmul.f32 1.442695, %v1440_v17  ;;  %v1880_v17 = vld [vmem:[%s2801_s4 + $0x4] sm:$0xf] }
 0x330   :  { %v1433_v4 = vpop.xlane.xlu1 %1432  ;;  %1465 = vadd.xlane.f32.xlu0 %v1464_v3 }
 0x331   :  { %v1441_v5 = vsub.f32 %v1409_v37, %v1433_v4 }
 0x332   :  { %v2684_v6 = vpop.eup %2432 }
 0x333   :  { %v1456_v7 = vmul.f32 1.442695, %v1441_v5  ;;  %v1467_v8 = vsel %vm1025_vm2, %v2684_v6, 0.0 }
 0x334   :  { %1468 = vadd.xlane.f32.xlu1 %v1467_v8 }
 0x335   :  { %2436 = vpow2.f32 %v1456_v7 }
 0x336   :  { %2438 = vpow2.f32 %v1450_v16 }
 0x337   :  { %2440 = vpow2.f32 %v1454_v19 }
 0x33a   :  { %v2688_v9 = vpop.eup %2434 }
 0x33b   :  { %v1473_v10 = vsel %vm1025_vm2, %v2688_v9, 0.0 }
 0x33c   :  { %1474 = vadd.xlane.f32.xlu1 %v1473_v10 }
 0x342   :  { %v2692_v11 = vpop.eup %2436 }
 0x343   :  { %v1479_v12 = vsel %vm1025_vm2, %v2692_v11, 0.0  ;;  %v2699_v20 = vpop.eup %2438 }
 0x344   :  { %1480 = vadd.xlane.f32.xlu1 %v1479_v12  ;;  %v1470_v21 = vsel %vm1025_vm2, %v2699_v20, 0.0  ;;  %v2703_v22 = vpop.eup %2440 }
 0x35d   :  { %867 = vxpose.xlu0.b32.start.end [1/1] (short) (narrow) %v2657_v44, 16  ;;  %v1476_v44 = vsel %vm1025_vm2, %v2703_v22, 0.0 }
 0x377   :  { %899 = vxpose.xlu1.b32.start.end [1/1] (short) (narrow) %v2661_v51, 16 }
 0x38e   :  { %1471 = vadd.xlane.f32.xlu0 %v1470_v21 }
 0x392   :  { %1477 = vadd.xlane.f32.xlu0 %v1476_v44  ;;  %v1881_v44 = vld [vmem:[%s2801_s4 + $0x8] sm:$0xf] }
 0x3b1   :  { %v1460_v51 = vpop.xlane.xlu0 %1459 }
 0x3b2   :  { %2442 = vrcp.f32 %v1460_v51 }
 0x3b5   :  { %v1463_v18 = vpop.xlane.xlu1 %1462 }
 0x3b6   :  { %2444 = vrcp.f32 %v1463_v18 }
 0x3b9   :  { %v1466_v23 = vpop.xlane.xlu0 %1465 }
 0x3ba   :  { %2446 = vrcp.f32 %v1466_v23 }
 0x3bd   :  { %v1469_v34 = vpop.xlane.xlu1 %1468 }
 0x3be   :  { %2448 = vrcp.f32 %v1469_v34 }
 0x3bf   :  { %931 = vxpose.xlu0.b32.start.end [1/1] (short) (narrow) %v2655_v41, 16  ;;  %v2443_v24 = vpop.eup %2442 }
 0x3c0   :  { %v1490_v27 = vmul.f32 %v2443_v24, %v2427_v61  ;;  %v1981_v24 = vsel %vm1509_vm4, %v1881_v44, 0 }
 0x3c2   :  { %v1498_v32 = vpack.c.bf16 %v1490_v27, %v1490_v27 }
 0x3c3   :  { %v2445_v28 = vpop.eup %2444 }
 0x3c4   :  { %963 = vxpose.xlu0.b32.start.end [1/1] (short) (narrow) %v2659_v45, 16  ;;  %v1491_v41 = vmul.f32 %v2445_v28, %v2429_v0 }
 0x3c5   :  { %v1475_v35 = vpop.xlane.xlu1 %1474 }
 0x3c6   :  { %v1499_v33 = vpack.c.bf16 %v1491_v41, %v1491_v41 }
 0x3c7   :  { %v2447_v37 = vpop.eup %2446 }
 0x3c8   :  { %v1492_v40 = vmul.f32 %v2447_v37, %v2680_v2 }
 0x3ca   :  { %v1500_v50 = vpack.c.bf16 %v1492_v40, %v1492_v40 }
 0x3cb   :  { %v2449_v42 = vpop.eup %2448 }
 0x3cc   :  { %v1493_v52 = vmul.f32 %v2449_v42, %v2684_v6 }
 0x3cd   :  { %v1481_v36 = vpop.xlane.xlu1 %1480 }
 0x3ce   :  { %v1501_v55 = vpack.c.bf16 %v1493_v52, %v1493_v52 }
 0x3d9   :  { %v883_v25 = vpop.trf.xlu0 }
 0x3da   :  { %v1011_v26 = vpack.c.bf16 %v883_v25, %v883_v25 }
 0x3dc   :  { %v1511_v29 = vsel %vm1509_vm4, %v1011_v26, 0 }
 0x3dd   :  { %2285 = vmatpush3.bf16.msra.mxu1 %v1511_v29  ;;  %v884_v30 = vpop.trf.xlu0 }
 0x3de   :  { %v1012_v31 = vpack.c.bf16 %v884_v30, %v884_v30  ;;  %2296 = vmatprep.subr.bf16.mxu1 %v2480_v48 }
 0x3e0   :  { %v1557_v45 = vsel %vm1509_vm4, %v1012_v31, 0  ;;  %2287 = vmatmul.mubr.msk.bf16.vlgmr.msra.gmra.mxu1 %vm1025_vm2, %v1498_v32  ;;  %v1882_v31 = vld [vmem:[%s2801_s4 + $0xc] sm:$0xf] }
 0x3e1   :  { %2291 = vmatpush3.bf16.msra.mxu0 %v1557_v45  ;;  %2298 = vmatprep.mubr.msk.bf16.mxu1 %vm2481_vm1, %v2480_v48 }
 0x3e2   :  { %2302 = vmatprep.subr.bf16.mxu0 %v2480_v48 }
 0x3e4   :  { %2293 = vmatmul.mubr.msk.bf16.vlgmr.msra.gmra.mxu0 %vm1025_vm2, %v1499_v33  ;;  %v2028_v33 = vsel %vm1509_vm4, %v1882_v31, 0 }
 0x3e5   :  { %2304 = vmatprep.mubr.msk.bf16.mxu0 %vm2481_vm1, %v2480_v48 }
 0x3f3   :  { %v915_v38 = vpop.trf.xlu1 }
 0x3f4   :  { %v1013_v39 = vpack.c.bf16 %v915_v38, %v915_v38 }
 0x3f6   :  { %v1603_v43 = vsel %vm1509_vm4, %v1013_v39, 0 }
 0x3f7   :  { %2297 = vmatpush3.bf16.msra.mxu1 %v1603_v43  ;;  %v916_v46 = vpop.trf.xlu1 }
 0x3f8   :  { %v1014_v47 = vpack.c.bf16 %v916_v46, %v916_v46  ;;  %2308 = vmatprep.subr.bf16.mxu1 %v2480_v48 }
 0x3fa   :  { %v1649_v54 = vsel %vm1509_vm4, %v1014_v47, 0  ;;  %2299 = vmatmul.mubr.msk.bf16.vlgmr.msra.gmra.mxu1 %vm1025_vm2, %v1500_v50 }
 0x3fb   :  { %2303 = vmatpush3.bf16.msra.mxu0 %v1649_v54  ;;  %2310 = vmatprep.mubr.msk.bf16.mxu1 %vm2481_vm1, %v2480_v48 }
 0x3fc   :  { %2314 = vmatprep.subr.bf16.mxu0 %v2480_v48 }
 0x3fe   :  { %2305 = vmatmul.mubr.msk.bf16.vlgmr.msra.gmra.mxu0 %vm1025_vm2, %v1501_v55 }
 0x3ff   :  { %2316 = vmatprep.mubr.msk.bf16.mxu0 %vm2481_vm1, %v2480_v48 }
 0x417   :  { %v1472_v56 = vpop.xlane.xlu0 %1471 }
 0x418   :  { %2450 = vrcp.f32 %v1472_v56 }
 0x419   :  { %2452 = vrcp.f32 %v1475_v35 }
 0x41b   :  { %v1478_v57 = vpop.xlane.xlu0 %1477 }
 0x41c   :  { %2454 = vrcp.f32 %v1478_v57 }
 0x41d   :  { %2456 = vrcp.f32 %v1481_v36 }
 0x425   :  { %v2451_v58 = vpop.eup %2450 }
 0x426   :  { %v1494_v61 = vmul.f32 %v2451_v58, %v2699_v20  ;;  %v2453_v62 = vpop.eup %2452 }
 0x427   :  { %v1495_v60 = vmul.f32 %v2453_v62, %v2688_v9  ;;  %v1879_v9 = vld [vmem:[%s2801_s4] sm:$0xf] }
 0x428   :  { %v1502_v1 = vpack.c.bf16 %v1494_v61, %v1494_v61  ;;  %v1887_v16 = vsel %vm1509_vm4, %v1879_v9, 0 }
 0x429   :  { %v2455_v2 = vpop.eup %2454  ;;  %v1503_v6 = vpack.c.bf16 %v1495_v60, %v1495_v60 }
 0x42a   :  { %v1496_v7 = vmul.f32 %v2455_v2, %v2703_v22  ;;  %v2457_v8 = vpop.eup %2456 }
 0x42b   :  { %v1497_v15 = vmul.f32 %v2457_v8, %v2692_v11  ;;  %v1934_v11 = vsel %vm1509_vm4, %v1880_v17, 0 }
 0x42c   :  { %v1504_v14 = vpack.c.bf16 %v1496_v7, %v1496_v7 }
 0x42d   :  { %v1505_v20 = vpack.c.bf16 %v1497_v15, %v1497_v15 }
 0x43b   :  { %v947_v49 = vpop.trf.xlu0 }
 0x43c   :  { %v1015_v59 = vpack.c.bf16 %v947_v49, %v947_v49 }
 0x43e   :  { %v1695_v63 = vsel %vm1509_vm4, %v1015_v59, 0 }
 0x43f   :  { %v948_v53 = vpop.trf.xlu0  ;;  %2309 = vmatpush3.bf16.msra.mxu1 %v1695_v63 }
 0x440   :  { %v1016_v0 = vpack.c.bf16 %v948_v53, %v948_v53  ;;  %2320 = vmatprep.subr.bf16.mxu1 %v2480_v48 }
 0x442   :  { %v1741_v3 = vsel %vm1509_vm4, %v1016_v0, 0  ;;  %2311 = vmatmul.mubr.msk.bf16.vlgmr.msra.gmra.mxu1 %vm1025_vm2, %v1502_v1 }
 0x443   :  { %v979_v4 = vpop.trf.xlu0  ;;  %2315 = vmatpush3.bf16.msra.mxu0 %v1741_v3  ;;  %2322 = vmatprep.mubr.msk.bf16.mxu1 %vm2481_vm1, %v2480_v48 }
 0x444   :  { %v1017_v5 = vpack.c.bf16 %v979_v4, %v979_v4  ;;  %2326 = vmatprep.subr.bf16.mxu0 %v2480_v48 }
 0x446   :  { %v1787_v10 = vsel %vm1509_vm4, %v1017_v5, 0  ;;  %2317 = vmatmul.mubr.msk.bf16.vlgmr.msra.gmra.mxu0 %vm1025_vm2, %v1503_v6 }
 0x447   :  { %v980_v12 = vpop.trf.xlu0  ;;  %2321 = vmatpush3.bf16.msra.mxu1 %v1787_v10  ;;  %2328 = vmatprep.mubr.msk.bf16.mxu0 %vm2481_vm1, %v2480_v48 }
 0x448   :  { %v1018_v13 = vpack.c.bf16 %v980_v12, %v980_v12  ;;  %2332 = vmatprep.subr.bf16.mxu1 %v2480_v48 }
 0x44a   :  { %v1833_v19 = vsel %vm1509_vm4, %v1018_v13, 0  ;;  %2323 = vmatmul.mubr.msk.bf16.vlgmr.msra.gmra.mxu1 %vm1025_vm2, %v1504_v14 }
 0x44b   :  { %2327 = vmatpush3.bf16.msra.mxu0 %v1833_v19  ;;  %2333 = vmatpush3.bf16.msra.mxu1 %v1887_v16 }
 0x44c   :  { %2334 = vmatprep.mubr.msk.bf16.mxu1 %vm2481_vm1, %v2480_v48  ;;  %2338 = vmatprep.subr.bf16.mxu0 %v2480_v48 }
 0x44d   :  { %2344 = vmatprep.subr.bf16.mxu1 %v2480_v48 }
 0x44e   :  { %2329 = vmatmul.mubr.msk.bf16.vlgmr.msra.gmra.mxu0 %vm1025_vm2, %v1505_v20 }
 0x44f   :  { %2339 = vmatpush3.bf16.msra.mxu0 %v1934_v11  ;;  %2340 = vmatprep.mubr.msk.bf16.mxu0 %vm2481_vm1, %v2480_v48  ;;  %v2168_v11 = vld [vmem:[%s2802_s5] ss:$0 sm:$0xff] }
 0x450   :  { %2350 = vmatprep.subr.bf16.mxu0 %v2480_v48 }
 0x4a0   :  { %v1547_v21 = vpop.f32.mrf.mxu1 }
 0x4a2   :  { %v2288_v22 = vpop.f32.mrf.mxu1 }
 0x4a4   :  { %v1550_v51 = vpop.f32.mrf.mxu1  ;;  %v1593_v18 = vpop.f32.mrf.mxu0 }
 0x4a5   :  { %v1875_v23 = vpack.c.bf16 %v1593_v18, %v1547_v21 }
 0x4a6   :  { %v2289_v25 = vpop.f32.mrf.mxu1  ;;  %v2294_v26 = vpop.f32.mrf.mxu0 }
 0x4a7   :  { %2335 = vmatmul.mubr.msk.bf16.vlgmr.msra.gmra.mxu1 %vm1025_vm2, %v1875_v23 }
 0x4a8   :  { %v1596_v27 = vpop.f32.mrf.mxu0  ;;  %2345 = vmatpush3.bf16.msra.mxu1 %v1981_v24  ;;  %2346 = vmatprep.mubr.msk.bf16.mxu1 %vm2481_vm1, %v2480_v48 }
 0x4aa   :  { %v2295_v28 = vpop.f32.mrf.mxu0 }
 0x4ba   :  { %v1639_v29 = vpop.f32.mrf.mxu1 }
 0x4bc   :  { %v2300_v30 = vpop.f32.mrf.mxu1 }
 0x4be   :  { %v1642_v32 = vpop.f32.mrf.mxu1  ;;  %v1685_v41 = vpop.f32.mrf.mxu0 }
 0x4bf   :  { %v1876_v45 = vpack.c.bf16 %v1685_v41, %v1639_v29 }
 0x4c0   :  { %v2301_v34 = vpop.f32.mrf.mxu1  ;;  %v2306_v35 = vpop.f32.mrf.mxu0 }
 0x4c1   :  { %2341 = vmatmul.mubr.msk.bf16.vlgmr.msra.gmra.mxu0 %vm1025_vm2, %v1876_v45 }
 0x4c2   :  { %v1688_v36 = vpop.f32.mrf.mxu0  ;;  %2351 = vmatpush3.bf16.msra.mxu0 %v2028_v33  ;;  %2352 = vmatprep.mubr.msk.bf16.mxu0 %vm2481_vm1, %v2480_v48 }
 0x4c4   :  { %v2307_v37 = vpop.f32.mrf.mxu0 }
 0x502   :  { %v1731_v38 = vpop.f32.mrf.mxu1 }
 0x504   :  { %v2312_v39 = vpop.f32.mrf.mxu1 }
 0x506   :  { %v1734_v40 = vpop.f32.mrf.mxu1  ;;  %v1777_v42 = vpop.f32.mrf.mxu0 }
 0x507   :  { %v1877_v43 = vpack.c.bf16 %v1777_v42, %v1731_v38 }
 0x508   :  { %v2313_v46 = vpop.f32.mrf.mxu1  ;;  %v2318_v47 = vpop.f32.mrf.mxu0 }
 0x509   :  { %2347 = vmatmul.mubr.msk.bf16.vlgmr.msra.gmra.mxu1 %vm1025_vm2, %v1877_v43 }
 0x50a   :  { %v1780_v50 = vpop.f32.mrf.mxu0  ;;  %v1823_v52 = vpop.f32.mrf.mxu1 }
 0x50c   :  { %v2319_v54 = vpop.f32.mrf.mxu0  ;;  %v2324_v55 = vpop.f32.mrf.mxu1 }
 0x50e   :  { %v1826_v56 = vpop.f32.mrf.mxu1  ;;  %v1869_v57 = vpop.f32.mrf.mxu0 }
 0x50f   :  { %v1878_v58 = vpack.c.bf16 %v1869_v57, %v1823_v52 }
 0x510   :  { %v2325_v49 = vpop.f32.mrf.mxu1  ;;  %v2330_v59 = vpop.f32.mrf.mxu0 }
 0x511   :  { %2353 = vmatmul.mubr.msk.bf16.vlgmr.msra.gmra.mxu0 %vm1025_vm2, %v1878_v58 }
 0x512   :  { %v1872_v48 = vpop.f32.mrf.mxu0 }
 0x514   :  { %v2331_v61 = vpop.f32.mrf.mxu0 }
 0x567   :  { %v1923_v62 = vpop.f32.mrf.mxu1 }
 0x568   :  { %v2071_v60 = vsel %vm166_vm0, %v1923_v62, 0.0 }
 0x569   :  { %v2336_v63 = vpop.f32.mrf.mxu1 }
 0x56b   :  { %v1926_v53 = vpop.f32.mrf.mxu1 }
 0x56c   :  { %v2078_v6 = vsel %vm166_vm0, %v1926_v53, 0.0 }
 0x56d   :  { %v2337_v0 = vpop.f32.mrf.mxu1 }
 0x581   :  { %v1970_v1 = vpop.f32.mrf.mxu0 }
 0x582   :  { %v2072_v2 = vsel %vm166_vm0, %v1970_v1, 0.0 }
 0x583   :  { %v2073_v3 = vadd.f32 %v2072_v2, %v2071_v60  ;;  %v2342_v4 = vpop.f32.mrf.mxu0 }
 0x585   :  { %v1973_v5 = vpop.f32.mrf.mxu0 }
 0x586   :  { %v2079_v7 = vsel %vm166_vm0, %v1973_v5, 0.0 }
 0x587   :  { %v2080_v8 = vadd.f32 %v2079_v7, %v2078_v6  ;;  %v2343_v9 = vpop.f32.mrf.mxu0 }
 0x5c9   :  { %v2017_v10 = vpop.f32.mrf.mxu1 }
 0x5ca   :  { %v2074_v14 = vsel %vm166_vm0, %v2017_v10, 0.0 }
 0x5cb   :  { %v2348_v12 = vpop.f32.mrf.mxu1  ;;  %v2075_v16 = vadd.f32 %v2074_v14, %v2073_v3 }
 0x5cd   :  { %v2020_v13 = vpop.f32.mrf.mxu1 }
 0x5ce   :  { %v2081_v19 = vsel %vm166_vm0, %v2020_v13, 0.0 }
 0x5cf   :  { %v2349_v15 = vpop.f32.mrf.mxu1  ;;  %v2082_v44 = vadd.f32 %v2081_v19, %v2080_v8 }
 0x5d1   :  { %v2064_v17 = vpop.f32.mrf.mxu0 }
 0x5d2   :  { %v2076_v20 = vsel %vm166_vm0, %v2064_v17, 0.0 }
 0x5d3   :  { %v2077_v21 = vadd.f32 %v2076_v20, %v2075_v16  ;;  %v2354_v22 = vpop.f32.mrf.mxu0 }
 0x5d5   :  { %v2092_v51 = vadd.f32 %v2168_v11, %v2077_v21  ;;  %v2067_v18 = vpop.f32.mrf.mxu0 }
 0x5d6   :  { %v2083_v23 = vsel %vm166_vm0, %v2067_v18, 0.0 }
 0x5d7   :  { %2094 = vst.msk [vmem:[#allocation2] sm:$0xff] %vm166_vm0, %v2092_v51  ;;  %v2084_v24 = vadd.f32 %v2083_v23, %v2082_v44  ;;  %v2355_v25 = vpop.f32.mrf.mxu0 }
 0x5d9   :  { %v2093_v26 = vadd.f32 %v2168_v11, %v2084_v24 }
 0x5db   :  { %2095 = vst.msk [vmem:[#allocation2 + $0x8] sm:$0xff] %vm166_vm0, %v2093_v26 }
 0x5dc   :  { %2469 = shalt.err (!%p2466_p4)
}
 0x5dd   :  { %s2484_s5 = smov 128   ;;  %s2485_s7 = smov 8  }
 0x5de   :  { %2107 = dma.vmem_to_hbm [thread:$0]  %s2102_s29, 256, %s2803_s6, [#allocation3], %s2484_s5, %s2484_s5, %s2485_s7  }
 0x5df   :  { %2478 = dma.done.wait [#allocation3], 256  }
 0x5e0   :  { %2479 = vsyncadd [#allocation3], 4294967040 }
 0x5e1   :  { %2111 = vsyncpa [#allocation3], 1 }

</bundles_post_ra>
